<compile_context>
chip_gen: v5e
topology: v5e:2x2
jax: 0.10.0
libtpu: 0.0.40
codegen_flags: <defaults>
</compile_context>

<pallas_src>
import functools

import jax
import jax.numpy as jnp
from jax.experimental import pallas as pl
from jax.experimental.pallas import tpu as pltpu

BN_EPS = 1e-5
_SUBLANE = 8
_TARGET_BLOCK_BYTES = 4 * 1024 * 1024   # per-grid-step working-set target
_VMEM_LIMIT_BYTES = 48 * 1024 * 1024    # <= ~48MiB: safe on v7x (64MiB phys), v5e/v6e (128MiB)


def _round_up(x, m):
    return (x + m - 1) // m * m


def _conv_image(x_img, w, offs, hw):
    """Valid-conv on the full input grid of one image.

    x_img: (Cin, HWp) bf16 value (HWp = H*W + halo, per-image zero halo pad).
    w:     (kh*kw, cp, Cin) bf16 value.
    Returns y: (cp, H*W) f32; columns follow the input H*W grid.  Positions
    with i >= Ho or j >= Wo hold garbage (row wrap-around / halo reads) and are
    masked (stats) or never stored (output).
    """
    acc = None
    for d, off in enumerate(offs):
        part = jnp.dot(w[d], x_img[:, off:off + hw],
                       preferred_element_type=jnp.float32)
        acc = part if acc is None else acc + part
    return acc


def _conv_stats_kernel(x_ref, w_ref, mask_ref, sum_ref, m2_ref, *,
                       offs, hw, n_valid, imgs_per_block):
    """Pass 1: per-image BN partials (masked sum, M2 around the image mean)."""
    w = w_ref[...]
    mask = mask_ref[...]                                   # (1, hw), 1.0 on valid cols
    for img in range(imgs_per_block):
        y = _conv_image(x_ref[img], w, offs, hw)           # (cp, hw) f32
        ym = y * mask
        s = jnp.sum(ym, axis=1, keepdims=True)             # (cp, 1)
        mean = s * (1.0 / n_valid)
        dev = (y - mean) * mask
        sum_ref[img] = s
        m2_ref[img] = jnp.sum(dev * dev, axis=1, keepdims=True)


def _bn_prelu_kernel(x_ref, w_ref, scale_ref, shift_ref, alpha_ref, out_ref, *,
                     offs, hw, width, out_h, out_w, imgs_per_block):
    """Pass 2: recompute conv, fused BN affine (scale/shift) + PReLU, compact store."""
    w = w_ref[...]
    scale = scale_ref[...]                                 # (cp, 1)
    shift = shift_ref[...]                                 # (cp, 1)
    alpha = alpha_ref[0]                                   # scalar from SMEM
    for img in range(imgs_per_block):
        y = _conv_image(x_ref[img], w, offs, hw)
        ybn = y * scale + shift
        ypr = jnp.where(ybn > 0, ybn, alpha * ybn)
        # Compact W-strided rows into Wo-strided rows (in VMEM, no HBM cost),
        # so the stored layout is directly [img, Cout, Ho*Wo].
        for r in range(out_h):
            out_ref[img, :, r * out_w:(r + 1) * out_w] = (
                ypr[:, r * width:r * width + out_w])


def _pick_images_per_block(n, bytes_per_img):
    """Largest divisor of n whose block hits ~_TARGET_BLOCK_BYTES, >=2 steps if n>=2."""
    cap = max(1, _TARGET_BLOCK_BYTES // max(1, bytes_per_img))
    if n >= 2:
        cap = min(cap, n // 2)          # keep >=2 grid steps (v7x: feed both TCs)
    cap = max(1, min(cap, n))
    for c in range(cap, 0, -1):
        if n % c == 0:
            return c
    return 1


def conv_block_forward(x, weight, bias, gamma, beta, alpha):
    """Conv2d(pad=0) -> BatchNorm2d (batch stats, eps=1e-5) -> PReLU. NCHW in/out.

    `bias` is accepted for API parity but unused: a per-channel constant added
    before training-mode BatchNorm is exactly cancelled by the mean subtraction.
    """
    del bias
    N, Cin, H, W = x.shape
    Cout, cin_w, kh, kw = weight.shape
    assert cin_w == Cin
    Ho, Wo = H - kh + 1, W - kw + 1
    HW = H * W
    HoWo = Ho * Wo
    halo = (kh - 1) * W + (kw - 1)
    HWp = HW + halo                     # per-image flat width incl. zero halo
    KK = kh * kw
    cp = _round_up(Cout, _SUBLANE)
    offs = tuple(di * W + dj for di in range(kh) for dj in range(kw))

    # Per-image working set: x block + out block + transient f32 conv tile.
    bytes_per_img = Cin * HWp * 2 + cp * HoWo * 4 + cp * HW * 4
    ipb = _pick_images_per_block(N, bytes_per_img)
    num_tiles = N // ipb

    # ---- input prep: one cast+pad pass over x (no transpose, no im2col) ----
    x_p = jnp.pad(x.reshape(N, Cin, HW), ((0, 0), (0, 0), (0, HWp - HW)))
    x_p = x_p.astype(jnp.bfloat16)                               # [N, Cin, HWp]
    w9 = jnp.transpose(weight, (2, 3, 0, 1)).reshape(KK, Cout, Cin)
    w9 = jnp.pad(w9, ((0, 0), (0, cp - Cout), (0, 0))).astype(jnp.bfloat16)
    col = jnp.arange(HW, dtype=jnp.int32)
    valid = ((col % W) < Wo) & ((col // W) < Ho)
    mask = valid.astype(jnp.float32).reshape(1, HW)              # [1, HW]

    x_spec = pl.BlockSpec((ipb, Cin, HWp), lambda t: (t, 0, 0))
    w_spec = pl.BlockSpec((KK, cp, Cin), lambda t: (0, 0, 0))    # resident

    # ---- pass 1: conv + per-image BN partials ------------------------------
    sums, m2s = pl.pallas_call(
        functools.partial(_conv_stats_kernel, offs=offs, hw=HW,
                          n_valid=float(HoWo), imgs_per_block=ipb),
        out_shape=(jax.ShapeDtypeStruct((N, cp, 1), jnp.float32),
                   jax.ShapeDtypeStruct((N, cp, 1), jnp.float32)),
        grid_spec=pltpu.PrefetchScalarGridSpec(
            num_scalar_prefetch=0,
            grid=(num_tiles,),
            in_specs=[x_spec, w_spec,
                      pl.BlockSpec((1, HW), lambda t: (0, 0))],  # resident mask
            out_specs=(pl.BlockSpec((ipb, cp, 1), lambda t: (t, 0, 0)),
                       pl.BlockSpec((ipb, cp, 1), lambda t: (t, 0, 0)))),
        compiler_params=pltpu.CompilerParams(
            dimension_semantics=("parallel",),
            vmem_limit_bytes=_VMEM_LIMIT_BYTES),
    )(x_p, w9, mask)

    # ---- tiny glue: Chan-style combine of per-image partials ---------------
    n_img = float(HoWo)
    M = float(N * HoWo)
    total = jnp.sum(sums, axis=0)                                # (cp, 1)
    mean = total / M
    mean_i = sums / n_img                                        # (N, cp, 1)
    m2_tot = jnp.sum(m2s, axis=0) + n_img * jnp.sum(
        (mean_i - mean[None]) ** 2, axis=0)
    var = jnp.maximum(m2_tot / M, 0.0)                           # biased (training) var
    gamma_c = jnp.pad(gamma.astype(jnp.float32), (0, cp - Cout),
                      constant_values=1.0).reshape(cp, 1)
    beta_c = jnp.pad(beta.astype(jnp.float32), (0, cp - Cout)).reshape(cp, 1)
    scale = gamma_c * jax.lax.rsqrt(var + BN_EPS)
    shift = beta_c - mean * scale
    alpha_s = jnp.asarray(alpha, jnp.float32).reshape(1)

    # ---- pass 2: recompute conv, BN affine + PReLU, direct NCHW-layout store
    out_p = pl.pallas_call(
        functools.partial(_bn_prelu_kernel, offs=offs, hw=HW,
                          width=W, out_h=Ho, out_w=Wo, imgs_per_block=ipb),
        out_shape=jax.ShapeDtypeStruct((N, cp, HoWo), jnp.float32),
        grid_spec=pltpu.PrefetchScalarGridSpec(
            num_scalar_prefetch=0,
            grid=(num_tiles,),
            in_specs=[x_spec, w_spec,
                      pl.BlockSpec((cp, 1), lambda t: (0, 0)),   # resident scale
                      pl.BlockSpec((cp, 1), lambda t: (0, 0)),   # resident shift
                      pl.BlockSpec(memory_space=pltpu.MemorySpace.SMEM)],
            out_specs=pl.BlockSpec((ipb, cp, HoWo), lambda t: (t, 0, 0))),
        compiler_params=pltpu.CompilerParams(
            dimension_semantics=("parallel",),
            vmem_limit_bytes=_VMEM_LIMIT_BYTES),
    )(x_p, w9, scale, shift, alpha_s)

    # Metadata-only reshape to NCHW (no HBM transpose pass).
    out = out_p[:, :Cout, :].reshape(N, Cout, Ho, Wo)
    return out


if __name__ == "__main__":
    # Small shapes consistent with the module: batch=2, Cin=4, H=W=16, Cout=8
    N, Cin, H, W = 2, 4, 16, 16
    Cout, k = 8, 3

    key = jax.random.PRNGKey(0)
    kx, kw_, kb, kg, kbe = jax.random.split(key, 5)

    x = jax.random.normal(kx, (N, Cin, H, W), dtype=jnp.float32)
    weight = jax.random.normal(kw_, (Cout, Cin, k, k), dtype=jnp.float32) * 0.1
    bias = jax.random.normal(kb, (Cout,), dtype=jnp.float32) * 0.1
    gamma = 1.0 + 0.1 * jax.random.normal(kg, (Cout,), dtype=jnp.float32)
    beta = 0.1 * jax.random.normal(kbe, (Cout,), dtype=jnp.float32)
    alpha = jnp.array(0.25, dtype=jnp.float32)             # PReLU default init

    out = conv_block_forward(x, weight, bias, gamma, beta, alpha)
    out = jax.block_until_ready(out)

    # Pure-JAX f32 reference (same training-mode BN semantics).  Tolerance
    # accounts for bf16 matmul inputs (accumulation is f32 on the MXU).
    ref_conv = jax.lax.conv_general_dilated(
        x, weight, window_strides=(1, 1), padding="VALID",
        dimension_numbers=("NCHW", "OIHW", "NCHW")) + bias[None, :, None, None]
    mean = ref_conv.mean(axis=(0, 2, 3), keepdims=True)
    var = ref_conv.var(axis=(0, 2, 3), keepdims=True)
    ref_bn = (ref_conv - mean) * jax.lax.rsqrt(var + BN_EPS)
    ref_bn = ref_bn * gamma[None, :, None, None] + beta[None, :, None, None]
    ref = jnp.where(ref_bn > 0, ref_bn, alpha * ref_bn)
    assert jnp.allclose(out, ref, atol=5e-2, rtol=5e-2), (
        "mismatch vs reference: max abs diff "
        f"{float(jnp.max(jnp.abs(out - ref))):.3e}")

    print("KERNEL_OK")
</pallas_src>

<mosaic_0001>
module attributes {stable_mosaic.version = 11 : i64} {
  func.func @_conv_stats_kernel(%arg0: i32, %arg1: memref<1x4x290xbf16, #tpu.memory_space<vmem>>, %arg2: memref<9x8x4xbf16, #tpu.memory_space<vmem>>, %arg3: memref<1x256xf32, #tpu.memory_space<vmem>>, %arg4: memref<1x8x1xf32, #tpu.memory_space<vmem>>, %arg5: memref<1x8x1xf32, #tpu.memory_space<vmem>>) attributes {dimension_semantics = [#tpu.dimension_semantics<parallel>], iteration_bounds = array<i64: 2>, scalar_prefetch = 0 : i64, scratch_operands = 0 : i64, tpu.core_type = #tpu.core_type<tc>, window_params = [{transform_indices = @transform_0, window_bounds = array<i64: 1, 4, 290>}, {pipeline_mode = #tpu.pipeline_mode<synchronous>, transform_indices = @transform_1, window_bounds = array<i64: 9, 8, 4>}, {pipeline_mode = #tpu.pipeline_mode<synchronous>, transform_indices = @transform_2, window_bounds = array<i64: 1, 256>}, {transform_indices = @transform_3, window_bounds = array<i64: 1, 8, 1>}, {transform_indices = @transform_4, window_bounds = array<i64: 1, 8, 1>}]} {
    %c0 = arith.constant 0 : index
    %c0_0 = arith.constant 0 : index
    %c0_1 = arith.constant 0 : index
    %0 = vector.load %arg2[%c0, %c0_0, %c0_1] : memref<9x8x4xbf16, #tpu.memory_space<vmem>>, vector<9x8x4xbf16>
    %c0_2 = arith.constant 0 : index
    %c0_3 = arith.constant 0 : index
    %1 = vector.load %arg3[%c0_2, %c0_3] : memref<1x256xf32, #tpu.memory_space<vmem>>, vector<1x256xf32>
    %c0_4 = arith.constant 0 : index
    %c0_5 = arith.constant 0 : index
    %c0_6 = arith.constant 0 : index
    %2 = vector.load %arg1[%c0_4, %c0_5, %c0_6] : memref<1x4x290xbf16, #tpu.memory_space<vmem>>, vector<1x4x290xbf16>
    %3 = vector.shape_cast %2 : vector<1x4x290xbf16> to vector<4x290xbf16>
    %4 = vector.extract_strided_slice %0 {offsets = [0, 0, 0], sizes = [1, 8, 4], strides = [1, 1, 1]} : vector<9x8x4xbf16> to vector<1x8x4xbf16>
    %5 = vector.shape_cast %4 : vector<1x8x4xbf16> to vector<8x4xbf16>
    %6 = vector.extract_strided_slice %3 {offsets = [0, 0], sizes = [4, 256], strides = [1, 1]} : vector<4x290xbf16> to vector<4x256xbf16>
    %cst = arith.constant dense<0.000000e+00> : vector<8x256xf32>
    %7 = tpu.matmul %5, %6, %cst {dimension_numbers = #tpu.dot_dimension_numbers<[1], [0], [0], [1], [0, 0, 1, 1], [], []>} : vector<8x4xbf16>, vector<4x256xbf16>, vector<8x256xf32> -> vector<8x256xf32>
    %8 = vector.extract_strided_slice %0 {offsets = [1, 0, 0], sizes = [1, 8, 4], strides = [1, 1, 1]} : vector<9x8x4xbf16> to vector<1x8x4xbf16>
    %9 = vector.shape_cast %8 : vector<1x8x4xbf16> to vector<8x4xbf16>
    %10 = vector.extract_strided_slice %3 {offsets = [0, 1], sizes = [4, 256], strides = [1, 1]} : vector<4x290xbf16> to vector<4x256xbf16>
    %cst_7 = arith.constant dense<0.000000e+00> : vector<8x256xf32>
    %11 = tpu.matmul %9, %10, %cst_7 {dimension_numbers = #tpu.dot_dimension_numbers<[1], [0], [0], [1], [0, 0, 1, 1], [], []>} : vector<8x4xbf16>, vector<4x256xbf16>, vector<8x256xf32> -> vector<8x256xf32>
    %12 = arith.addf %7, %11 : vector<8x256xf32>
    %13 = vector.extract_strided_slice %0 {offsets = [2, 0, 0], sizes = [1, 8, 4], strides = [1, 1, 1]} : vector<9x8x4xbf16> to vector<1x8x4xbf16>
    %14 = vector.shape_cast %13 : vector<1x8x4xbf16> to vector<8x4xbf16>
    %15 = vector.extract_strided_slice %3 {offsets = [0, 2], sizes = [4, 256], strides = [1, 1]} : vector<4x290xbf16> to vector<4x256xbf16>
    %cst_8 = arith.constant dense<0.000000e+00> : vector<8x256xf32>
    %16 = tpu.matmul %14, %15, %cst_8 {dimension_numbers = #tpu.dot_dimension_numbers<[1], [0], [0], [1], [0, 0, 1, 1], [], []>} : vector<8x4xbf16>, vector<4x256xbf16>, vector<8x256xf32> -> vector<8x256xf32>
    %17 = arith.addf %12, %16 : vector<8x256xf32>
    %18 = vector.extract_strided_slice %0 {offsets = [3, 0, 0], sizes = [1, 8, 4], strides = [1, 1, 1]} : vector<9x8x4xbf16> to vector<1x8x4xbf16>
    %19 = vector.shape_cast %18 : vector<1x8x4xbf16> to vector<8x4xbf16>
    %20 = vector.extract_strided_slice %3 {offsets = [0, 16], sizes = [4, 256], strides = [1, 1]} : vector<4x290xbf16> to vector<4x256xbf16>
    %cst_9 = arith.constant dense<0.000000e+00> : vector<8x256xf32>
    %21 = tpu.matmul %19, %20, %cst_9 {dimension_numbers = #tpu.dot_dimension_numbers<[1], [0], [0], [1], [0, 0, 1, 1], [], []>} : vector<8x4xbf16>, vector<4x256xbf16>, vector<8x256xf32> -> vector<8x256xf32>
    %22 = arith.addf %17, %21 : vector<8x256xf32>
    %23 = vector.extract_strided_slice %0 {offsets = [4, 0, 0], sizes = [1, 8, 4], strides = [1, 1, 1]} : vector<9x8x4xbf16> to vector<1x8x4xbf16>
    %24 = vector.shape_cast %23 : vector<1x8x4xbf16> to vector<8x4xbf16>
    %25 = vector.extract_strided_slice %3 {offsets = [0, 17], sizes = [4, 256], strides = [1, 1]} : vector<4x290xbf16> to vector<4x256xbf16>
    %cst_10 = arith.constant dense<0.000000e+00> : vector<8x256xf32>
    %26 = tpu.matmul %24, %25, %cst_10 {dimension_numbers = #tpu.dot_dimension_numbers<[1], [0], [0], [1], [0, 0, 1, 1], [], []>} : vector<8x4xbf16>, vector<4x256xbf16>, vector<8x256xf32> -> vector<8x256xf32>
    %27 = arith.addf %22, %26 : vector<8x256xf32>
    %28 = vector.extract_strided_slice %0 {offsets = [5, 0, 0], sizes = [1, 8, 4], strides = [1, 1, 1]} : vector<9x8x4xbf16> to vector<1x8x4xbf16>
    %29 = vector.shape_cast %28 : vector<1x8x4xbf16> to vector<8x4xbf16>
    %30 = vector.extract_strided_slice %3 {offsets = [0, 18], sizes = [4, 256], strides = [1, 1]} : vector<4x290xbf16> to vector<4x256xbf16>
    %cst_11 = arith.constant dense<0.000000e+00> : vector<8x256xf32>
    %31 = tpu.matmul %29, %30, %cst_11 {dimension_numbers = #tpu.dot_dimension_numbers<[1], [0], [0], [1], [0, 0, 1, 1], [], []>} : vector<8x4xbf16>, vector<4x256xbf16>, vector<8x256xf32> -> vector<8x256xf32>
    %32 = arith.addf %27, %31 : vector<8x256xf32>
    %33 = vector.extract_strided_slice %0 {offsets = [6, 0, 0], sizes = [1, 8, 4], strides = [1, 1, 1]} : vector<9x8x4xbf16> to vector<1x8x4xbf16>
    %34 = vector.shape_cast %33 : vector<1x8x4xbf16> to vector<8x4xbf16>
    %35 = vector.extract_strided_slice %3 {offsets = [0, 32], sizes = [4, 256], strides = [1, 1]} : vector<4x290xbf16> to vector<4x256xbf16>
    %cst_12 = arith.constant dense<0.000000e+00> : vector<8x256xf32>
    %36 = tpu.matmul %34, %35, %cst_12 {dimension_numbers = #tpu.dot_dimension_numbers<[1], [0], [0], [1], [0, 0, 1, 1], [], []>} : vector<8x4xbf16>, vector<4x256xbf16>, vector<8x256xf32> -> vector<8x256xf32>
    %37 = arith.addf %32, %36 : vector<8x256xf32>
    %38 = vector.extract_strided_slice %0 {offsets = [7, 0, 0], sizes = [1, 8, 4], strides = [1, 1, 1]} : vector<9x8x4xbf16> to vector<1x8x4xbf16>
    %39 = vector.shape_cast %38 : vector<1x8x4xbf16> to vector<8x4xbf16>
    %40 = vector.extract_strided_slice %3 {offsets = [0, 33], sizes = [4, 256], strides = [1, 1]} : vector<4x290xbf16> to vector<4x256xbf16>
    %cst_13 = arith.constant dense<0.000000e+00> : vector<8x256xf32>
    %41 = tpu.matmul %39, %40, %cst_13 {dimension_numbers = #tpu.dot_dimension_numbers<[1], [0], [0], [1], [0, 0, 1, 1], [], []>} : vector<8x4xbf16>, vector<4x256xbf16>, vector<8x256xf32> -> vector<8x256xf32>
    %42 = arith.addf %37, %41 : vector<8x256xf32>
    %43 = vector.extract_strided_slice %0 {offsets = [8, 0, 0], sizes = [1, 8, 4], strides = [1, 1, 1]} : vector<9x8x4xbf16> to vector<1x8x4xbf16>
    %44 = vector.shape_cast %43 : vector<1x8x4xbf16> to vector<8x4xbf16>
    %45 = vector.extract_strided_slice %3 {offsets = [0, 34], sizes = [4, 256], strides = [1, 1]} : vector<4x290xbf16> to vector<4x256xbf16>
    %cst_14 = arith.constant dense<0.000000e+00> : vector<8x256xf32>
    %46 = tpu.matmul %44, %45, %cst_14 {dimension_numbers = #tpu.dot_dimension_numbers<[1], [0], [0], [1], [0, 0, 1, 1], [], []>} : vector<8x4xbf16>, vector<4x256xbf16>, vector<8x256xf32> -> vector<8x256xf32>
    %47 = arith.addf %42, %46 : vector<8x256xf32>
    %48 = vector.broadcast %1 : vector<1x256xf32> to vector<8x256xf32>
    %49 = arith.mulf %47, %48 : vector<8x256xf32>
    %cst_15 = arith.constant dense<0.000000e+00> : vector<8xf32>
    %50 = vector.multi_reduction <add>, %49, %cst_15 [1] : vector<8x256xf32> to vector<8xf32>
    %51 = vector.shape_cast %50 : vector<8xf32> to vector<8x1xf32>
    %cst_16 = arith.constant 0.00510204071 : f32
    %52 = vector.broadcast %cst_16 : f32 to vector<8x1xf32>
    %53 = arith.mulf %51, %52 : vector<8x1xf32>
    %54 = vector.broadcast %53 : vector<8x1xf32> to vector<8x256xf32>
    %55 = arith.subf %47, %54 : vector<8x256xf32>
    %56 = vector.broadcast %1 : vector<1x256xf32> to vector<8x256xf32>
    %57 = arith.mulf %55, %56 : vector<8x256xf32>
    %c0_17 = arith.constant 0 : index
    %c0_18 = arith.constant 0 : index
    %c0_19 = arith.constant 0 : index
    %58 = vector.load %arg4[%c0_17, %c0_18, %c0_19] : memref<1x8x1xf32, #tpu.memory_space<vmem>>, vector<1x8x1xf32>
    %59 = vector.shape_cast %58 : vector<1x8x1xf32> to vector<8x1xf32>
    %60 = vector.shape_cast %51 : vector<8x1xf32> to vector<1x8x1xf32>
    tpu.vector_store %arg4[%c0_17, %c0_18, %c0_19], %60 {strides = array<i32>} : memref<1x8x1xf32, #tpu.memory_space<vmem>>, vector<1x8x1xf32>,
    %61 = arith.mulf %57, %57 : vector<8x256xf32>
    %cst_20 = arith.constant dense<0.000000e+00> : vector<8xf32>
    %62 = vector.multi_reduction <add>, %61, %cst_20 [1] : vector<8x256xf32> to vector<8xf32>
    %63 = vector.shape_cast %62 : vector<8xf32> to vector<8x1xf32>
    %c0_21 = arith.constant 0 : index
    %c0_22 = arith.constant 0 : index
    %c0_23 = arith.constant 0 : index
    %64 = vector.load %arg5[%c0_21, %c0_22, %c0_23] : memref<1x8x1xf32, #tpu.memory_space<vmem>>, vector<1x8x1xf32>
    %65 = vector.shape_cast %64 : vector<1x8x1xf32> to vector<8x1xf32>
    %66 = vector.shape_cast %63 : vector<8x1xf32> to vector<1x8x1xf32>
    tpu.vector_store %arg5[%c0_21, %c0_22, %c0_23], %66 {strides = array<i32>} : memref<1x8x1xf32, #tpu.memory_space<vmem>>, vector<1x8x1xf32>,
    return
  }
  func.func @transform_0(%arg0: i32) -> (i32, i32, i32) {
    %c0_i32 = arith.constant 0 : i32
    %c0_i32_0 = arith.constant 0 : i32
    %c0_i32_1 = arith.constant 0 : i32
    return %arg0, %c0_i32, %c0_i32_0 : i32, i32, i32
  }
  func.func @transform_1(%arg0: i32) -> (i32, i32, i32) {
    %c0_i32 = arith.constant 0 : i32
    %c0_i32_0 = arith.constant 0 : i32
    %c0_i32_1 = arith.constant 0 : i32
    %c0_i32_2 = arith.constant 0 : i32
    return %c0_i32, %c0_i32_0, %c0_i32_1 : i32, i32, i32
  }
  func.func @transform_2(%arg0: i32) -> (i32, i32) {
    %c0_i32 = arith.constant 0 : i32
    %c0_i32_0 = arith.constant 0 : i32
    %c0_i32_1 = arith.constant 0 : i32
    return %c0_i32, %c0_i32_0 : i32, i32
  }
  func.func @transform_3(%arg0: i32) -> (i32, i32, i32) {
    %c0_i32 = arith.constant 0 : i32
    %c0_i32_0 = arith.constant 0 : i32
    %c0_i32_1 = arith.constant 0 : i32
    return %arg0, %c0_i32, %c0_i32_0 : i32, i32, i32
  }
  func.func @transform_4(%arg0: i32) -> (i32, i32, i32) {
    %c0_i32 = arith.constant 0 : i32
    %c0_i32_0 = arith.constant 0 : i32
    %c0_i32_1 = arith.constant 0 : i32
    return %arg0, %c0_i32, %c0_i32_0 : i32, i32, i32
  }
}

</mosaic_0001>

<bundles_post_ra>
// kernel: tpu_custom_call.1
= control target key start
LH: loop header
LB: loop body
LE: loop exit
PB: predicated region body
PF: predicated region fallthrough
CT: control target
= control target key end

     0   :  { %s873_s15 = smov 0   ;;  %s965_s0 = inlined_call_operand.vmem [shape: bf16[2,4,290], index: 0, kind: input, shape index: {}]   ;;  %s966_s1 = inlined_call_operand.vmem [shape: bf16[9,8,4], index: 1, kind: input, shape index: {}]   ;;  %s967_s2 = inlined_call_operand.vmem [shape: f32[1,256], index: 2, kind: input, shape index: {}]   ;;  %s968_s3 = inlined_call_operand.vmem [shape: f32[2,8,1], index: 3, kind: output, shape index: {0}]   ;;  %s969_s4 = inlined_call_operand.vmem [shape: f32[2,8,1], index: 4, kind: output, shape index: {1}]  }
   0x1 LB: > { %s787_s16 = sadd.s32 4294967295, %s838_s15   ;;  %p791_p0 = scmp.ge.s32.totalorder %s838_s15, 1  ;;  %s838_s15 = sphi %s873_s15, %s15_s15  }
   0x2   : > { %p165_p1 = scmp.lt.s32.totalorder %s838_s15, 3 }
   0x4   : > { %p166_p2 = pnand %p791_p0, %p165_p1 }
   0x5   : > { %p194_p3 = scmp.lt.s32.totalorder (!%p166_p2), %s787_s16, 1  ;;  %s840_s21 = smov (!%p166_p2), 127  }
   0x6   : > { %169 = sbr.rel (%p166_p2) target bundleno = 592 (0x250), region = 32  ;;  %s841_s22 = smov (!%p166_p2), 126  }
   0x7   : > { %s842_s23 = smov (!%p166_p2), 112   ;;  %s843_s24 = smov (!%p166_p2), 111  }
   0x8   : > { %s844_s25 = smov (!%p166_p2), 110   ;;  %s845_s26 = smov (!%p166_p2), 96  }
   0x9   : > { %s846_s27 = smov (!%p166_p2), 95   ;;  %s847_s28 = smov (!%p166_p2), 94  }
   0xb   : > { %s971_s16 = smov (!%p194_p3, %s787_s16), 1  ;;  %vm240_vm0 = vcmask 1041408   ;;  %v208_v29 = vld [vmem:[%s966_s1] sm:$0xf]  ;;  %vm236_vm1 = vcmask 31744   ;;  %vm322_vm2 = vcmask 1031168  }
   0xc   : > { %s815_s17 = smul.u32 6, %s971_s16  ;;  %vm233_vm3 = vcmask 1039360   ;;  %v209_v41 = vld [vmem:[%s966_s1 + $0x4] sm:$0xf]  ;;  %vm375_vm4 = vcmask 916480   ;;  %vm428_vm5 = vcmask 908288  }
   0xd   : > { %v210_v49 = vld [vmem:[%s966_s1 + $0x8] sm:$0xf]  ;;  %v211_v53 = vld [vmem:[%s966_s1 + $0xc] sm:$0xf]  ;;  %vm481_vm6 = vcmask 900096   ;;  %vm534_vm7 = vcmask 785408  }
   0xe   : > { %s198_s20 = scalar_lea.vmem %s965_s0, %s815_s17  ;;  %v212_v62 = vld [vmem:[%s966_s1 + $0x10] sm:$0xf]  ;;  %vm587_vm8 = vcmask 777216   ;;  %vm640_vm9 = vcmask 769024   ;;  %vm695_vm10 = vcmask 7168  }
   0xf   : > { %v218_v0 = vld [vmem:[%s198_s20] sm:$0x3f] }
  0x10   : > { %220 = vst [vmem:[#allocation1] ss:$4 sm:$0xff] %v218_v0 }
  0x17   : > { %v221_v1 = vld.sshfl [vmem:[#allocation1] sm:$0xff pattern:$0x73625140]  ;;  %v225_v2 = vld.sshfl [vmem:[#allocation1 + $0x10] sm:$0xff pattern:$0x73625140] }
  0x18   : > { %227 = vrot.lane.b32.xlu0 %v221_v1, %s840_s21  ;;  %231 = vrot.lane.b32.xlu1 %v225_v2, %s840_s21  ;;  %v223_v3 = vld.sshfl [vmem:[#allocation1 + $0x8] sm:$0xff pattern:$0x73625140] }
  0x19   : > { %273 = vst [vmem:[#allocation1] ss:$4 sm:$0xff] %v218_v0 }
  0x20   : > { %229 = vrot.lane.b32.xlu0 %v223_v3, %s840_s21  ;;  %v274_v4 = vld.sshfl [vmem:[#allocation1] sm:$0xff pattern:$0x73625140]  ;;  %v275_v5 = vld.sshfl [vmem:[#allocation1 + $0x8] sm:$0xff pattern:$0x73625140] }
  0x21   : > { %309 = vst [vmem:[#allocation1] ss:$4 sm:$0xff] %v218_v0  ;;  %v279_v27 = vsel %vm240_vm0, %v274_v4, 0  ;;  %v281_v28 = vsel %vm240_vm0, %v275_v5, 0  ;;  %v213_v5 = vld [vmem:[%s966_s1 + $0x14] sm:$0xf] }
  0x22   : > { %290 = vmatpush.bf16.msra.mxu2 %v279_v27  ;;  %303 = vmatpush.bf16.msra.mxu3 %v281_v28 }
  0x25   : > { %797 = vmatmul.msk.bf16.vlgmr.msra.gmra.mxu2 %vm236_vm1, %v208_v29  ;;  %798 = vmatmul.msk.bf16.vlgmr.msra.gmra.mxu3 %vm236_vm1, %v208_v29  ;;  %v216_v29 = vld [vmem:[%s966_s1 + $0x20] sm:$0xf] }
  0x28   : > { %v310_v6 = vld.sshfl [vmem:[#allocation1] sm:$0xff pattern:$0x73625140]  ;;  %v312_v7 = vld.sshfl [vmem:[#allocation1 + $0x8] sm:$0xff pattern:$0x73625140] }
  0x29   : > { %316 = vrot.lane.b32.xlu1 %v310_v6, %s841_s22  ;;  %v314_v8 = vld.sshfl [vmem:[#allocation1 + $0x10] sm:$0xff pattern:$0x73625140]  ;;  %318 = vrot.lane.b32.xlu2 %v312_v7, %s841_s22 }
  0x2a   : > { %362 = vst [vmem:[#allocation1] ss:$4 sm:$0xff] %v218_v0 }
  0x31   : > { %v367_v9 = vld.sshfl [vmem:[#allocation1 + $0x10] sm:$0xff pattern:$0x73625140]  ;;  %v365_v10 = vld.sshfl [vmem:[#allocation1 + $0x8] sm:$0xff pattern:$0x73625140]  ;;  %320 = vrot.lane.b32.xlu2 %v314_v8, %s841_s22 }
  0x32   : > { %371 = vrot.lane.b32.xlu1 %v365_v10, %s842_s23  ;;  %v363_v11 = vld.sshfl [vmem:[#allocation1] sm:$0xff pattern:$0x73625140] }
  0x33   : > { %369 = vrot.lane.b32.xlu0 %v363_v11, %s842_s23  ;;  %415 = vst [vmem:[#allocation1] ss:$4 sm:$0xff] %v218_v0 }
  0x39   : > { %373 = vrot.lane.b32.xlu2 %v367_v9, %s842_s23 }
  0x3a   : > { %v418_v12 = vld.sshfl [vmem:[#allocation1 + $0x8] sm:$0xff pattern:$0x73625140]  ;;  %v420_v13 = vld.sshfl [vmem:[#allocation1 + $0x10] sm:$0xff pattern:$0x73625140] }
  0x3b   : > { %424 = vrot.lane.b32.xlu1 %v418_v12, %s843_s24  ;;  %v416_v14 = vld.sshfl [vmem:[#allocation1] sm:$0xff pattern:$0x73625140] }
  0x3c   : > { %422 = vrot.lane.b32.xlu0 %v416_v14, %s843_s24  ;;  %468 = vst [vmem:[#allocation1] ss:$4 sm:$0xff] %v218_v0 }
  0x41   : > { %426 = vrot.lane.b32.xlu2 %v420_v13, %s843_s24  ;;  %v214_v13 = vld [vmem:[%s966_s1 + $0x18] sm:$0xf] }
  0x43   : > { %v471_v15 = vld.sshfl [vmem:[#allocation1 + $0x8] sm:$0xff pattern:$0x73625140]  ;;  %v473_v16 = vld.sshfl [vmem:[#allocation1 + $0x10] sm:$0xff pattern:$0x73625140] }
  0x44   : > { %477 = vrot.lane.b32.xlu1 %v471_v15, %s844_s25  ;;  %v469_v17 = vld.sshfl [vmem:[#allocation1] sm:$0xff pattern:$0x73625140] }
  0x45   : > { %475 = vrot.lane.b32.xlu0 %v469_v17, %s844_s25  ;;  %521 = vst [vmem:[#allocation1] ss:$4 sm:$0xff] %v218_v0 }
  0x49   : > { %479 = vrot.lane.b32.xlu2 %v473_v16, %s844_s25  ;;  %s793_s25 = sshll.u32 %s971_s16, 3 }
  0x4a   : > { %s206_s16 = scalar_lea.vmem %s969_s4, %s793_s25 }
  0x4c   : > { %v524_v18 = vld.sshfl [vmem:[#allocation1 + $0x8] sm:$0xff pattern:$0x73625140]  ;;  %v526_v19 = vld.sshfl [vmem:[#allocation1 + $0x10] sm:$0xff pattern:$0x73625140] }
  0x4d   : > { %530 = vrot.lane.b32.xlu1 %v524_v18, %s845_s26  ;;  %v522_v20 = vld.sshfl [vmem:[#allocation1] sm:$0xff pattern:$0x73625140] }
  0x4e   : > { %528 = vrot.lane.b32.xlu0 %v522_v20, %s845_s26  ;;  %574 = vst [vmem:[#allocation1] ss:$4 sm:$0xff] %v218_v0 }
  0x51   : > { %532 = vrot.lane.b32.xlu2 %v526_v19, %s845_s26 }
  0x55   : > { %v579_v21 = vld.sshfl [vmem:[#allocation1 + $0x10] sm:$0xff pattern:$0x73625140]  ;;  %v577_v22 = vld.sshfl [vmem:[#allocation1 + $0x8] sm:$0xff pattern:$0x73625140] }
  0x56   : > { %583 = vrot.lane.b32.xlu1 %v577_v22, %s846_s27  ;;  %v575_v23 = vld.sshfl [vmem:[#allocation1] sm:$0xff pattern:$0x73625140] }
  0x57   : > { %581 = vrot.lane.b32.xlu0 %v575_v23, %s846_s27  ;;  %627 = vst [vmem:[#allocation1] ss:$4 sm:$0xff] %v218_v0 }
  0x59   : > { %585 = vrot.lane.b32.xlu2 %v579_v21, %s846_s27  ;;  %v215_v21 = vld [vmem:[%s966_s1 + $0x1c] sm:$0xf] }
  0x5e   : > { %v630_v24 = vld.sshfl [vmem:[#allocation1 + $0x8] sm:$0xff pattern:$0x73625140]  ;;  %v628_v25 = vld.sshfl [vmem:[#allocation1] sm:$0xff pattern:$0x73625140] }
  0x5f   : > { %636 = vrot.lane.b32.xlu1 %v630_v24, %s847_s28  ;;  %634 = vrot.lane.b32.xlu0 %v628_v25, %s847_s28  ;;  %v632_v26 = vld.sshfl [vmem:[#allocation1 + $0x10] sm:$0xff pattern:$0x73625140] }
  0x61   : > { %638 = vrot.lane.b32.xlu2 %v632_v26, %s847_s28  ;;  %s202_s28 = scalar_lea.vmem %s968_s3, %s793_s25 }
  0x83   : > { %v319_v30 = vpop.permute.xlu2 %318 }
  0x8a   : > { %v228_v31 = vpop.permute.xlu0 %227  ;;  %v232_v33 = vpop.permute.xlu1 %231 }
  0x8b   : > { %v321_v32 = vpop.permute.xlu2 %320 }
  0x8c   : > { %v324_v34 = vsel %vm322_vm2, %v319_v30, %v321_v32 }
  0x8d   : > { %v332_v38 = vsel %vm240_vm0, %v324_v34, 0 }
  0x92   : > { %v230_v35 = vpop.permute.xlu0 %229 }
  0x93   : > { %v234_v36 = vsel %vm233_vm3, %v228_v31, %v230_v35  ;;  %v235_v37 = vsel %vm233_vm3, %v230_v35, %v232_v33  ;;  %v374_v45 = vpop.permute.xlu2 %373 }
  0x94   : > { %v242_v39 = vsel %vm240_vm0, %v234_v36, 0  ;;  %v245_v40 = vsel %vm240_vm0, %v235_v37, 0 }
  0x95   : > { %254 = vmatpush.bf16.msra.mxu0 %v242_v39  ;;  %267 = vmatpush.bf16.msra.mxu1 %v245_v40 }
  0x98   : > { %795 = vmatmul.msk.bf16.vlgmr.msra.gmra.mxu0 %vm236_vm1, %v209_v41  ;;  %796 = vmatmul.msk.bf16.vlgmr.msra.gmra.mxu1 %vm236_vm1, %v209_v41 }
  0x99   : > { %354 = vmatpush.bf16.msrb.mxu1 %v332_v38 }
  0x9b   : > { %v317_v42 = vpop.permute.xlu1 %316  ;;  %v427_v54 = vpop.permute.xlu2 %426 }
  0x9c   : > { %v323_v43 = vsel %vm322_vm2, %v317_v42, %v319_v30 }
  0x9d   : > { %v329_v44 = vsel %vm240_vm0, %v323_v43, 0 }
  0x9e   : > { %341 = vmatpush.bf16.msrb.mxu0 %v329_v44 }
  0xa3   : > { %v480_v61 = vpop.permute.xlu2 %479 }
  0xa4   : > { %v372_v46 = vpop.permute.xlu1 %371 }
  0xa5   : > { %v370_v47 = vpop.permute.xlu0 %369  ;;  %v377_v48 = vsel %vm375_vm4, %v372_v46, %v374_v45 }
  0xa6   : > { %v376_v50 = vsel %vm375_vm4, %v370_v47, %v372_v46  ;;  %v385_v51 = vsel %vm240_vm0, %v377_v48, 0 }
  0xa7   : > { %v382_v52 = vsel %vm240_vm0, %v376_v50, 0  ;;  %407 = vmatpush.bf16.msrb.mxu3 %v385_v51 }
  0xa8   : > { %394 = vmatpush.bf16.msrb.mxu2 %v382_v52  ;;  %799 = vmatmul.msk.bf16.vlgmr.msrb.gmra.mxu0 %vm236_vm1, %v210_v49  ;;  %v292_v30 = vpop.f32.mrf.mxu2  ;;  %v305_v31 = vpop.f32.mrf.mxu3 }
  0xa9   : > { %800 = vmatmul.msk.bf16.vlgmr.msrb.gmra.mxu1 %vm236_vm1, %v210_v49 }
  0xaa   : > { %802 = vmatmul.msk.bf16.vlgmr.msrb.gmra.mxu3 %vm236_vm1, %v211_v53 }
  0xab   : > { %801 = vmatmul.msk.bf16.vlgmr.msrb.gmra.mxu2 %vm236_vm1, %v211_v53  ;;  %v533_v6 = vpop.permute.xlu2 %532 }
  0xad   : > { %v425_v55 = vpop.permute.xlu1 %424 }
  0xae   : > { %v430_v56 = vsel %vm428_vm5, %v425_v55, %v427_v54  ;;  %v423_v57 = vpop.permute.xlu0 %422 }
  0xaf   : > { %v438_v58 = vsel %vm240_vm0, %v430_v56, 0  ;;  %v429_v59 = vsel %vm428_vm5, %v423_v57, %v425_v55 }
  0xb0   : > { %v435_v60 = vsel %vm240_vm0, %v429_v59, 0  ;;  %460 = vmatpush.bf16.msra.mxu1 %v438_v58  ;;  %v294_v32 = vpop.f32.mrf.mxu2  ;;  %v307_v33 = vpop.f32.mrf.mxu3 }
  0xb1   : > { %447 = vmatpush.bf16.msra.mxu0 %v435_v60 }
  0xb3   : > { %v586_v14 = vpop.permute.xlu2 %585 }
  0xb6   : > { %v478_v63 = vpop.permute.xlu1 %477 }
  0xb7   : > { %v483_v0 = vsel %vm481_vm6, %v478_v63, %v480_v61  ;;  %v476_v1 = vpop.permute.xlu0 %475 }
  0xb8   : > { %v491_v2 = vsel %vm240_vm0, %v483_v0, 0  ;;  %v482_v3 = vsel %vm481_vm6, %v476_v1, %v478_v63  ;;  %803 = vmatmul.msk.bf16.vlgmr.msra.gmra.mxu0 %vm236_vm1, %v212_v62 }
  0xb9   : > { %v488_v4 = vsel %vm240_vm0, %v482_v3, 0  ;;  %513 = vmatpush.bf16.msra.mxu3 %v491_v2  ;;  %804 = vmatmul.msk.bf16.vlgmr.msra.gmra.mxu1 %vm236_vm1, %v212_v62 }
  0xba   : > { %500 = vmatpush.bf16.msra.mxu2 %v488_v4 }
  0xbb   : > { %v639_v22 = vpop.permute.xlu2 %638 }
  0xbc   : > { %806 = vmatmul.msk.bf16.vlgmr.msra.gmra.mxu3 %vm236_vm1, %v213_v5 }
  0xbd   : > { %805 = vmatmul.msk.bf16.vlgmr.msra.gmra.mxu2 %vm236_vm1, %v213_v5  ;;  %v217_v5 = vld [vmem:[%s967_s2] sm:$0x3] }
  0xbf   : > { %v531_v7 = vpop.permute.xlu1 %530 }
  0xc0   : > { %v536_v8 = vsel %vm534_vm7, %v531_v7, %v533_v6  ;;  %v529_v9 = vpop.permute.xlu0 %528 }
  0xc1   : > { %v544_v10 = vsel %vm240_vm0, %v536_v8, 0  ;;  %v535_v11 = vsel %vm534_vm7, %v529_v9, %v531_v7 }
  0xc2   : > { %v541_v12 = vsel %vm240_vm0, %v535_v11, 0  ;;  %566 = vmatpush.bf16.msrb.mxu1 %v544_v10  ;;  %v681_v10 = vperm.slane %v217_v5, 0 }
  0xc3   : > { %553 = vmatpush.bf16.msrb.mxu0 %v541_v12 }
  0xc8   : > { %v584_v15 = vpop.permute.xlu1 %583  ;;  %807 = vmatmul.msk.bf16.vlgmr.msrb.gmra.mxu0 %vm236_vm1, %v214_v13 }
  0xc9   : > { %v589_v16 = vsel %vm587_vm8, %v584_v15, %v586_v14  ;;  %v582_v17 = vpop.permute.xlu0 %581  ;;  %808 = vmatmul.msk.bf16.vlgmr.msrb.gmra.mxu1 %vm236_vm1, %v214_v13  ;;  %v682_v13 = vperm.slane %v217_v5, 1 }
  0xca   : > { %v597_v18 = vsel %vm240_vm0, %v589_v16, 0  ;;  %v588_v19 = vsel %vm587_vm8, %v582_v17, %v584_v15 }
  0xcb   : > { %v594_v20 = vsel %vm240_vm0, %v588_v19, 0  ;;  %619 = vmatpush.bf16.msrb.mxu3 %v597_v18 }
  0xcc   : > { %606 = vmatpush.bf16.msrb.mxu2 %v594_v20 }
  0xce   : > { %810 = vmatmul.msk.bf16.vlgmr.msrb.gmra.mxu3 %vm236_vm1, %v215_v21 }
  0xcf   : > { %809 = vmatmul.msk.bf16.vlgmr.msrb.gmra.mxu2 %vm236_vm1, %v215_v21 }
  0xd1   : > { %v637_v23 = vpop.permute.xlu1 %636  ;;  %v635_v24 = vpop.permute.xlu0 %634 }
  0xd2   : > { %v642_v25 = vsel %vm640_vm9, %v637_v23, %v639_v22  ;;  %v641_v26 = vsel %vm640_vm9, %v635_v24, %v637_v23 }
  0xd3   : > { %v650_v27 = vsel %vm240_vm0, %v642_v25, 0  ;;  %v647_v28 = vsel %vm240_vm0, %v641_v26, 0 }
  0xd4   : > { %659 = vmatpush.bf16.msra.mxu0 %v647_v28  ;;  %672 = vmatpush.bf16.msra.mxu1 %v650_v27 }
  0xd8   : > { %811 = vmatmul.msk.bf16.vlgmr.msra.gmra.mxu0 %vm236_vm1, %v216_v29 }
  0xd9   : > { %812 = vmatmul.msk.bf16.vlgmr.msra.gmra.mxu1 %vm236_vm1, %v216_v29 }
 0x115   : > { %v256_v34 = vpop.f32.mrf.mxu0  ;;  %v269_v35 = vpop.f32.mrf.mxu1 }
 0x116   : > { %v293_v55 = vadd.f32 %v292_v30, %v256_v34  ;;  %v306_v57 = vadd.f32 %v305_v31, %v269_v35 }
 0x11d   : > { %v258_v36 = vpop.f32.mrf.mxu0  ;;  %v271_v37 = vpop.f32.mrf.mxu1 }
 0x125   : > { %v343_v38 = vpop.f32.mrf.mxu0 }
 0x126   : > { %v356_v39 = vpop.f32.mrf.mxu1  ;;  %v360_v58 = vadd.f32 %v343_v38, %v293_v55 }
 0x127   : > { %v361_v59 = vadd.f32 %v356_v39, %v306_v57 }
 0x12d   : > { %v409_v40 = vpop.f32.mrf.mxu3  ;;  %v345_v41 = vpop.f32.mrf.mxu0 }
 0x12e   : > { %v396_v42 = vpop.f32.mrf.mxu2  ;;  %v358_v43 = vpop.f32.mrf.mxu1  ;;  %v414_v61 = vadd.f32 %v409_v40, %v361_v59 }
 0x12f   : > { %v413_v60 = vadd.f32 %v396_v42, %v360_v58 }
 0x135   : > { %v411_v44 = vpop.f32.mrf.mxu3  ;;  %v449_v45 = vpop.f32.mrf.mxu0 }
 0x136   : > { %v398_v46 = vpop.f32.mrf.mxu2  ;;  %v462_v47 = vpop.f32.mrf.mxu1  ;;  %v466_v63 = vadd.f32 %v449_v45, %v413_v60 }
 0x137   : > { %v467_v1 = vadd.f32 %v462_v47, %v414_v61 }
 0x13d   : > { %v451_v48 = vpop.f32.mrf.mxu0 }
 0x13e   : > { %v464_v49 = vpop.f32.mrf.mxu1 }
 0x13f   : > { %v515_v50 = vpop.f32.mrf.mxu3 }
 0x140   : > { %v502_v51 = vpop.f32.mrf.mxu2  ;;  %v520_v3 = vadd.f32 %v515_v50, %v467_v1 }
 0x141   : > { %v519_v2 = vadd.f32 %v502_v51, %v466_v63 }
 0x145   : > { %v555_v52 = vpop.f32.mrf.mxu0 }
 0x146   : > { %v568_v53 = vpop.f32.mrf.mxu1  ;;  %v572_v6 = vadd.f32 %v555_v52, %v519_v2 }
 0x147   : > { %v517_v54 = vpop.f32.mrf.mxu3  ;;  %v573_v8 = vadd.f32 %v568_v53, %v520_v3 }
 0x148   : > { %v504_v56 = vpop.f32.mrf.mxu2 }
 0x14d   : > { %v557_v62 = vpop.f32.mrf.mxu0 }
 0x14e   : > { %v570_v0 = vpop.f32.mrf.mxu1 }
 0x151   : > { %v621_v4 = vpop.f32.mrf.mxu3 }
 0x152   : > { %v608_v7 = vpop.f32.mrf.mxu2  ;;  %v626_v11 = vadd.f32 %v621_v4, %v573_v8 }
 0x153   : > { %v625_v9 = vadd.f32 %v608_v7, %v572_v6 }
 0x155   : > { %v661_v12 = vpop.f32.mrf.mxu0 }
 0x156   : > { %v678_v14 = vadd.f32 %v661_v12, %v625_v9  ;;  %v674_v15 = vpop.f32.mrf.mxu1 }
 0x157   : > { %v679_v16 = vadd.f32 %v674_v15, %v626_v11 }
 0x158   : > { %v685_v17 = vmul.f32 %v681_v10, %v678_v14 }
 0x159   : > { %v686_v18 = vmul.f32 %v682_v13, %v679_v16  ;;  %v623_v19 = vpop.f32.mrf.mxu3 }
 0x15a   : > { %v610_v20 = vpop.f32.mrf.mxu2 }
 0x15b   : > { %v687_v21 = vadd.f32 %v686_v18, %v685_v17 }
 0x15d   : > { %688 = vadd.xlane.f32.xlu0 %v687_v21  ;;  %v663_v22 = vpop.f32.mrf.mxu0 }
 0x15e   : > { %v676_v23 = vpop.f32.mrf.mxu1 }
 0x1d0   : > { %v689_v24 = vpop.xlane.xlu0 %688 }
 0x1d1   : > { %v690_v25 = vmul.f32 0.0051020407, %v689_v24  ;;  %696 = vst.msk [vmem:[%s202_s28] sm:$0xff] %vm695_vm10, %v689_v24 }
 0x1d3   : > { %v691_v26 = vsub.f32 %v678_v14, %v690_v25  ;;  %v692_v27 = vsub.f32 %v679_v16, %v690_v25 }
 0x1d5   : > { %v693_v28 = vmul.f32 %v691_v26, %v681_v10  ;;  %v694_v29 = vmul.f32 %v692_v27, %v682_v13 }
 0x1d7   : > { %v697_v30 = vmul.f32 %v693_v28, %v693_v28  ;;  %v698_v31 = vmul.f32 %v694_v29, %v694_v29 }
 0x1d9   : > { %v699_v32 = vadd.f32 %v698_v31, %v697_v30 }
 0x1db   : > { %700 = vadd.xlane.f32.xlu1 %v699_v32 }
 0x24e   : > { %v701_v33 = vpop.xlane.xlu1 %700 }
 0x24f   : > { %702 = vst.msk [vmem:[%s206_s16] sm:$0xff] %vm695_vm10, %v701_v33 }
 0x250 PF: > { %s15_s15 = sadd.s32 1, %s838_s15  }
 0x251   : > { %p12_p4 = scmp.ge.s32.totalorder %s15_s15, 4  }
 0x253   :  { %14 = sbr.rel (!%p12_p4) target bundleno = 1 (0x1), region = 74 }

</bundles_post_ra>
